<compile_context>
chip_gen: v5e
topology: v5e:2x2
jax: 0.10.0
libtpu: 0.0.40
codegen_flags: <defaults>
</compile_context>

<pallas_src>
import functools

import jax
import jax.numpy as jnp
from jax.experimental import pallas as pl
from jax.experimental.pallas import tpu as pltpu


def _round_up(n, m):
    return ((n + m - 1) // m) * m


def _mlp_kernel(xp_ref, w1_ref, b1_ref, w2_ref, b2_ref, o_ref):
    # hidden = ReLU( [x, pref] @ W1 + b1 )   (bf16 MXU operands, f32 accumulate)
    h = jnp.dot(xp_ref[...], w1_ref[...], preferred_element_type=jnp.float32)
    h = jnp.maximum(h + b1_ref[...], 0.0)
    # out = hidden @ W2 + b2
    out = jnp.dot(h.astype(w2_ref.dtype), w2_ref[...],
                  preferred_element_type=jnp.float32) + b2_ref[...]
    o_ref[...] = out.astype(o_ref.dtype)


@functools.partial(jax.jit, static_argnames=("batch_tile",))
def abstract_nn_forward(x, pref, params, *, batch_tile=256):
    """Forward pass of AbstractNN with a 2-layer MLP model.

    x:    [batch, dim_in]  float32
    pref: [batch, dim_p]   float32 or None (matches `if pref is not None: cat`)
    """
    w1, b1, w2, b2 = params["w1"], params["b1"], params["w2"], params["b2"]
    if pref is not None:
        x = jnp.concatenate([x, pref], axis=1)   # torch.cat([x, pref], dim=1)

    batch, fan_in = x.shape
    hidden = w1.shape[1]
    dim_out = w2.shape[1]
    assert w1.shape[0] == fan_in, "weight fan-in must match x (+ pref) features"

    # --- batch tiling: sublane-aligned tile, pad batch so the grid divides ---
    bp = _round_up(batch, 8)
    tb = min(batch_tile, bp)           # tb is a multiple of 8 (or == full batch)
    bp = _round_up(bp, tb)
    if bp != batch:
        x = jnp.pad(x, ((0, bp - batch), (0, 0)))
    grid = (bp // tb,)

    # --- bf16 MXU operands; biases stay f32 (added after f32 accumulation) ---
    x_bf = x.astype(jnp.bfloat16)
    w1_bf = w1.astype(jnp.bfloat16)
    w2_bf = w2.astype(jnp.bfloat16)
    b1_2d = b1.reshape(1, hidden).astype(jnp.float32)
    b2_2d = b2.reshape(1, dim_out).astype(jnp.float32)

    out = pl.pallas_call(
        _mlp_kernel,
        out_shape=jax.ShapeDtypeStruct((bp, dim_out), jnp.float32),
        grid=grid,
        in_specs=[
            pl.BlockSpec((tb, fan_in), lambda i: (i, 0)),       # activations: tiled over batch
            pl.BlockSpec((fan_in, hidden), lambda i: (0, 0)),   # W1: resident
            pl.BlockSpec((1, hidden), lambda i: (0, 0)),        # b1: resident
            pl.BlockSpec((hidden, dim_out), lambda i: (0, 0)),  # W2: resident
            pl.BlockSpec((1, dim_out), lambda i: (0, 0)),       # b2: resident
        ],
        out_specs=pl.BlockSpec((tb, dim_out), lambda i: (i, 0)),
        compiler_params=pltpu.CompilerParams(
            dimension_semantics=("parallel",),      # megacore-shard the batch axis
            vmem_limit_bytes=32 * 1024 * 1024,      # safe on v5e/v6e (128 MiB) and v7x (64 MiB)
        ),
    )(x_bf, w1_bf, b1_2d, w2_bf, b2_2d)

    return out[:batch]


def make_params(dim_in, dim_p, dim_out, hidden, key):
    """Deterministic synthetic parameters (no checkpoint loading)."""
    k1, k2, k3, k4 = jax.random.split(key, 4)
    fan_in1 = dim_in + dim_p
    w1 = jax.random.normal(k1, (fan_in1, hidden), jnp.float32) / jnp.sqrt(fan_in1)
    b1 = jax.random.normal(k2, (hidden,), jnp.float32) * 0.01
    w2 = jax.random.normal(k3, (hidden, dim_out), jnp.float32) / jnp.sqrt(hidden)
    b2 = jax.random.normal(k4, (dim_out,), jnp.float32) * 0.01
    return {"w1": w1, "b1": b1, "w2": w2, "b2": b2}


def reference_forward(x, pref, params):
    """Pure-JAX f32 reference of the same forward (concat -> MLP)."""
    xp = jnp.concatenate([x, pref], axis=1) if pref is not None else x
    h = jnp.maximum(xp @ params["w1"] + params["b1"], 0.0)
    return h @ params["w2"] + params["b2"]


if __name__ == "__main__":
    # Small shapes consistent with the module's forward signature.
    batch, dim_in, dim_p, hidden, dim_out = 8, 16, 4, 32, 8

    key = jax.random.PRNGKey(0)
    kx, kp, kparams, kx2, kp2 = jax.random.split(key, 5)
    params = make_params(dim_in, dim_p, dim_out, hidden, kparams)

    # Case 1: tiny batch (single block), with pref.
    x = jax.random.normal(kx, (batch, dim_in), jnp.float32)
    pref = jax.random.normal(kp, (batch, dim_p), jnp.float32)
    out = jax.block_until_ready(abstract_nn_forward(x, pref, params))
    ref = reference_forward(x, pref, params)
    assert out.shape == (batch, dim_out)
    assert jnp.allclose(out, ref, atol=5e-2, rtol=5e-2), \
        float(jnp.max(jnp.abs(out - ref)))

    # Case 2: larger, non-multiple batch exercises the tiled/padded grid path.
    big = 1043
    x2 = jax.random.normal(kx2, (big, dim_in), jnp.float32)
    pref2 = jax.random.normal(kp2, (big, dim_p), jnp.float32)
    out2 = jax.block_until_ready(abstract_nn_forward(x2, pref2, params))
    ref2 = reference_forward(x2, pref2, params)
    assert out2.shape == (big, dim_out)
    assert jnp.allclose(out2, ref2, atol=5e-2, rtol=5e-2), \
        float(jnp.max(jnp.abs(out2 - ref2)))

    # Case 3: pref is None (the `if pref is not None` branch of the module).
    params_np = make_params(dim_in, 0, dim_out, hidden, kparams)
    out3 = jax.block_until_ready(abstract_nn_forward(x, None, params_np))
    ref3 = reference_forward(x, None, params_np)
    assert out3.shape == (batch, dim_out)
    assert jnp.allclose(out3, ref3, atol=5e-2, rtol=5e-2), \
        float(jnp.max(jnp.abs(out3 - ref3)))

    print("KERNEL_OK")
</pallas_src>

<mosaic_0001>
module attributes {stable_mosaic.version = 11 : i64} {
  func.func @_mlp_kernel(%arg0: i32, %arg1: memref<8x20xbf16, #tpu.memory_space<vmem>>, %arg2: memref<20x32xbf16, #tpu.memory_space<vmem>>, %arg3: memref<1x32xf32, #tpu.memory_space<vmem>>, %arg4: memref<32x8xbf16, #tpu.memory_space<vmem>>, %arg5: memref<1x8xf32, #tpu.memory_space<vmem>>, %arg6: memref<8x8xf32, #tpu.memory_space<vmem>>) attributes {dimension_semantics = [#tpu.dimension_semantics<parallel>], iteration_bounds = array<i64: 1>, scalar_prefetch = 0 : i64, scratch_operands = 0 : i64, tpu.core_type = #tpu.core_type<tc>, window_params = [{transform_indices = @transform_0, window_bounds = array<i64: 8, 20>}, {pipeline_mode = #tpu.pipeline_mode<synchronous>, transform_indices = @transform_1, window_bounds = array<i64: 20, 32>}, {pipeline_mode = #tpu.pipeline_mode<synchronous>, transform_indices = @transform_2, window_bounds = array<i64: 1, 32>}, {pipeline_mode = #tpu.pipeline_mode<synchronous>, transform_indices = @transform_3, window_bounds = array<i64: 32, 8>}, {pipeline_mode = #tpu.pipeline_mode<synchronous>, transform_indices = @transform_4, window_bounds = array<i64: 1, 8>}, {transform_indices = @transform_5, window_bounds = array<i64: 8, 8>}]} {
    %c0 = arith.constant 0 : index
    %c0_0 = arith.constant 0 : index
    %0 = vector.load %arg1[%c0, %c0_0] : memref<8x20xbf16, #tpu.memory_space<vmem>>, vector<8x20xbf16>
    %c0_1 = arith.constant 0 : index
    %c0_2 = arith.constant 0 : index
    %1 = vector.load %arg2[%c0_1, %c0_2] : memref<20x32xbf16, #tpu.memory_space<vmem>>, vector<20x32xbf16>
    %cst = arith.constant dense<0.000000e+00> : vector<8x32xf32>
    %2 = tpu.matmul %0, %1, %cst {dimension_numbers = #tpu.dot_dimension_numbers<[1], [0], [0], [1], [0, 0, 1, 1], [], []>} : vector<8x20xbf16>, vector<20x32xbf16>, vector<8x32xf32> -> vector<8x32xf32>
    %c0_3 = arith.constant 0 : index
    %c0_4 = arith.constant 0 : index
    %3 = vector.load %arg3[%c0_3, %c0_4] : memref<1x32xf32, #tpu.memory_space<vmem>>, vector<1x32xf32>
    %4 = vector.broadcast %3 : vector<1x32xf32> to vector<8x32xf32>
    %5 = arith.addf %2, %4 : vector<8x32xf32>
    %cst_5 = arith.constant 0.000000e+00 : f32
    %6 = vector.broadcast %cst_5 : f32 to vector<8x32xf32>
    %7 = arith.maximumf %5, %6 : vector<8x32xf32>
    %8 = arith.truncf %7 : vector<8x32xf32> to vector<8x32xbf16>
    %c0_6 = arith.constant 0 : index
    %c0_7 = arith.constant 0 : index
    %9 = vector.load %arg4[%c0_6, %c0_7] : memref<32x8xbf16, #tpu.memory_space<vmem>>, vector<32x8xbf16>
    %cst_8 = arith.constant dense<0.000000e+00> : vector<8x8xf32>
    %10 = tpu.matmul %8, %9, %cst_8 {dimension_numbers = #tpu.dot_dimension_numbers<[1], [0], [0], [1], [0, 0, 1, 1], [], []>} : vector<8x32xbf16>, vector<32x8xbf16>, vector<8x8xf32> -> vector<8x8xf32>
    %c0_9 = arith.constant 0 : index
    %c0_10 = arith.constant 0 : index
    %11 = vector.load %arg5[%c0_9, %c0_10] : memref<1x8xf32, #tpu.memory_space<vmem>>, vector<1x8xf32>
    %12 = vector.broadcast %11 : vector<1x8xf32> to vector<8x8xf32>
    %13 = arith.addf %10, %12 : vector<8x8xf32>
    %c0_11 = arith.constant 0 : index
    %c0_12 = arith.constant 0 : index
    %14 = vector.load %arg6[%c0_11, %c0_12] : memref<8x8xf32, #tpu.memory_space<vmem>>, vector<8x8xf32>
    tpu.vector_store %arg6[%c0_11, %c0_12], %13 {strides = array<i32>} : memref<8x8xf32, #tpu.memory_space<vmem>>, vector<8x8xf32>,
    return
  }
  func.func @transform_0(%arg0: i32) -> (i32, i32) {
    %c0_i32 = arith.constant 0 : i32
    %c0_i32_0 = arith.constant 0 : i32
    return %arg0, %c0_i32 : i32, i32
  }
  func.func @transform_1(%arg0: i32) -> (i32, i32) {
    %c0_i32 = arith.constant 0 : i32
    %c0_i32_0 = arith.constant 0 : i32
    %c0_i32_1 = arith.constant 0 : i32
    return %c0_i32, %c0_i32_0 : i32, i32
  }
  func.func @transform_2(%arg0: i32) -> (i32, i32) {
    %c0_i32 = arith.constant 0 : i32
    %c0_i32_0 = arith.constant 0 : i32
    %c0_i32_1 = arith.constant 0 : i32
    return %c0_i32, %c0_i32_0 : i32, i32
  }
  func.func @transform_3(%arg0: i32) -> (i32, i32) {
    %c0_i32 = arith.constant 0 : i32
    %c0_i32_0 = arith.constant 0 : i32
    %c0_i32_1 = arith.constant 0 : i32
    return %c0_i32, %c0_i32_0 : i32, i32
  }
  func.func @transform_4(%arg0: i32) -> (i32, i32) {
    %c0_i32 = arith.constant 0 : i32
    %c0_i32_0 = arith.constant 0 : i32
    %c0_i32_1 = arith.constant 0 : i32
    return %c0_i32, %c0_i32_0 : i32, i32
  }
  func.func @transform_5(%arg0: i32) -> (i32, i32) {
    %c0_i32 = arith.constant 0 : i32
    %c0_i32_0 = arith.constant 0 : i32
    return %arg0, %c0_i32 : i32, i32
  }
}

</mosaic_0001>

<bundles_post_ra>
// kernel: abstract_nn_forward.1
= control target key start
LH: loop header
LB: loop body
LE: loop exit
PB: predicated region body
PF: predicated region fallthrough
CT: control target
= control target key end

     0   :  { %vm43_vm0 = vcmask 1041408   ;;  %s218_s0 = inlined_call_operand.vmem [shape: bf16[8,20], index: 0, kind: input, shape index: {}]   ;;  %s219_s1 = inlined_call_operand.vmem [shape: bf16[20,32], index: 1, kind: input, shape index: {}]   ;;  %s220_s2 = inlined_call_operand.vmem [shape: f32[1,32], index: 2, kind: input, shape index: {}]   ;;  %s221_s3 = inlined_call_operand.vmem [shape: bf16[32,8], index: 3, kind: input, shape index: {}]   ;;  %s222_s4 = inlined_call_operand.vmem [shape: f32[1,8], index: 4, kind: input, shape index: {}]   ;;  %s223_s5 = inlined_call_operand.hbm [shape: f32[8,8], index: 5, kind: output, shape index: {}]  }
   0x1   :  { %v25_v0 = vld [vmem:[%s219_s1 + $0x8] sm:$0x3] }
   0x2   :  { %v35_v1 = vunpack.c.l.b16 %v25_v0 }
   0x3   :  { %10 = vsyncpa [#allocation3], 0  ;;  %v131_v4 = vld [vmem:[%s219_s1] sm:$0xff]  ;;  %vm39_vm1 = vcmask 162816   ;;  %v133_v6 = vld [vmem:[%s221_s3 + $0x8] sm:$0xff]  ;;  %vm82_vm2 = vcmask 261120  }
   0x4   :  { %v37_v2 = vpack.c.b16 %v35_v1, %v35_v1  ;;  %v22_v5 = vld [vmem:[%s218_s0] sm:$0xf]  ;;  %92 = vmatpush.bf16.msra.mxu1 %v133_v6  ;;  %s163_s30 = smov [#allocation2]   ;;  %s108_s8 = sshll.u32 %s223_s5, 4  ;;  %vm99_vm3 = vcmask 64512   ;;  %s109_s8 = int_to_ptr.hbm [resolvable:$true] %s108_s8 }
   0x5   :  { %v132_v7 = vld [vmem:[%s221_s3] sm:$0xff]  ;;  %s106_s6 = sshll.u32 %s163_s30, 4  ;;  %s107_s6 = int_to_ptr.vmem [resolvable:$true] %s106_s6 }
   0x6   :  { %v45_v3 = vsel %vm43_vm0, %v37_v2, 0  ;;  %v135_v8 = vld [vmem:[%s220_s2] ss:$0 sm:$0xff] }
   0x7   :  { %53 = vmatpush.bf16.msra.mxu0 %v45_v3  ;;  %v136_v14 = vld [vmem:[%s222_s4] ss:$0 sm:$0xff] }
   0x8   :  { %93 = vmatpush.bf16.msra.mxu1 %v132_v7 }
   0xb   :  { %54 = vmatpush.bf16.msra.mxu0 %v131_v4 }
   0xe   :  { %121 = vmatmul.msk.bf16.vlgmr.msra.gmra.mxu0 %vm39_vm1, %v22_v5 }
  0x8b   :  { %v56_v9 = vpop.f32.mrf.mxu0 }
  0x8c   :  { %v57_v10 = vadd.f32 %v135_v8, %v56_v9 }
  0x8e   :  { %v60_v11 = vmax.f32 %v57_v10, 0.0 }
  0x90   :  { %v61_v12 = vpack.c.bf16 %v60_v11, %v60_v11 }
  0x92   :  { %130 = vmatmul.msk.bf16.vlgmr.msra.gmra.mxu1 %vm82_vm2, %v61_v12 }
  0x93   :  { %v58_v13 = vpop.f32.mrf.mxu0 }
 0x10f   :  { %v95_v15 = vpop.f32.mrf.mxu1 }
 0x110   :  { %v96_v16 = vadd.f32 %v136_v14, %v95_v15 }
 0x112   :  { %100 = vst.msk [vmem:[#allocation2] sm:$0xff] %vm99_vm3, %v96_v16 }
 0x113   :  { %111 = dma.vmem_to_hbm [thread:$0]  %s107_s6, 128, %s109_s8, [#allocation3]  }
 0x117   :  { %v97_v17 = vpop.f32.mrf.mxu1 }
 0x118   :  { %161 = dma.done.wait [#allocation3], 128  }
 0x119   :  { %162 = vsyncadd [#allocation3], 4294967168 }
 0x11a   :  { %116 = vsyncpa [#allocation3], 1 }

</bundles_post_ra>
